<compile_context>
chip_gen: v6e
topology: v6e:2x2x1
jax: 0.10.0
libtpu: 0.0.40
codegen_flags: <defaults>
</compile_context>

<pallas_src>
from functools import partial

import numpy as np
import jax
import jax.numpy as jnp
from jax.experimental import pallas as pl
from jax.experimental.pallas import tpu as pltpu

BN_EPS = 1e-5
LANE = 128


def _round_up(n, m):
    return ((n + m - 1) // m) * m


def _fused_mlp_kernel(*refs, bn_flags, relu_flags, n_rows):
    """refs = (x_ref, [w, b, gamma, beta] * num_layers, o_ref)."""
    num_layers = len(bn_flags)
    x_ref = refs[0]
    o_ref = refs[-1]
    layer_refs = refs[1:-1]

    y = x_ref[...]                       # f32 activations, stay in vregs
    inv_n = 1.0 / float(n_rows)          # trace-time constant
    single_scale = float(1.0 / np.sqrt(1.0 + BN_EPS))

    for i in range(num_layers):
        w_ref, b_ref, g_ref, bt_ref = layer_refs[4 * i: 4 * i + 4]
        # MXU matmul with f32 accumulation (lane-dense padded Fout).
        y = jnp.dot(y, w_ref[...], preferred_element_type=jnp.float32)

        if bn_flags[i]:
            if n_rows > 1:
                # Bias dropped: it cancels under mean subtraction.
                mean = jnp.sum(y, axis=0, keepdims=True) * inv_n
                ex2 = jnp.sum(y * y, axis=0, keepdims=True) * inv_n
                var = jnp.maximum(ex2 - mean * mean, 0.0)   # biased batch var
                scale = g_ref[...] * jax.lax.rsqrt(var + BN_EPS)
                y = (y - mean) * scale + bt_ref[...]
            else:
                # allow_single_element: eval-mode with fresh running stats
                # (running_mean=0, running_var=1) -> near-identity affine.
                y = (y + b_ref[...]) * (g_ref[...] * single_scale) + bt_ref[...]
        else:
            y = y + b_ref[...]

        if relu_flags[i]:
            y = jnp.maximum(y, 0.0)

    o_ref[...] = y.astype(o_ref.dtype)


def fused_regression_forward(x, layer_params, bn_flags, relu_flags):
    """x: [N, Fin].  layer_params: list of (w, b, gamma, beta) padded arrays."""
    N = x.shape[0]
    fout_pad = layer_params[-1][0].shape[1]

    inputs = [x]
    in_specs = [pl.BlockSpec(x.shape, lambda: (0, 0))]
    flops = 0
    bytes_accessed = x.size * 4 + N * fout_pad * 4
    for (w, b, g, bt) in layer_params:
        for arr in (w, b, g, bt):
            inputs.append(arr)
            in_specs.append(pl.BlockSpec(arr.shape, lambda: (0, 0)))
            bytes_accessed += arr.size * 4
        flops += 2 * N * w.shape[0] * w.shape[1]

    kernel = partial(_fused_mlp_kernel,
                     bn_flags=tuple(bool(f) for f in bn_flags),
                     relu_flags=tuple(bool(f) for f in relu_flags),
                     n_rows=N)

    return pl.pallas_call(
        kernel,
        out_shape=jax.ShapeDtypeStruct((N, fout_pad), jnp.float32),
        in_specs=in_specs,
        out_specs=pl.BlockSpec((N, fout_pad), lambda: (0, 0)),
        cost_estimate=pl.CostEstimate(flops=flops, transcendentals=0,
                                      bytes_accessed=bytes_accessed),
        compiler_params=pltpu.CompilerParams(
            vmem_limit_bytes=32 * 1024 * 1024),
    )(*inputs)


class RegressionLayerPallas:
    """Mirror of RegressionLayer(RegressionArchitecture(...)) with a fused
    single-kernel Pallas forward pass."""

    def __init__(self, features, activation_relu, batch_normalise, key):
        assert len(features) == len(activation_relu) + 1
        assert len(activation_relu) == len(batch_normalise)
        self.features = list(features)
        self.activation_relu = list(activation_relu)
        self.batch_normalise = list(batch_normalise)
        self.params = []          # padded, lane-dense parameters

        fin_prev_pad = features[0]          # first layer keeps natural Fin
        for i in range(len(activation_relu)):
            fin, fout = features[i], features[i + 1]
            fout_pad = _round_up(fout, LANE)
            key, kw, kb = jax.random.split(key, 3)
            bound = 1.0 / np.sqrt(fin)       # PyTorch-like uniform init
            w = jax.random.uniform(kw, (fin, fout), jnp.float32, -bound, bound)
            b = jax.random.uniform(kb, (1, fout), jnp.float32, -bound, bound)
            # Zero-pad: extra input rows and extra output columns are zero, so
            # padded lanes carry exact zeros through every layer.
            w_pad = jnp.zeros((fin_prev_pad, fout_pad), jnp.float32)
            w_pad = w_pad.at[:fin, :fout].set(w)
            b_pad = jnp.zeros((1, fout_pad), jnp.float32).at[:, :fout].set(b)
            gamma = jnp.zeros((1, fout_pad), jnp.float32).at[:, :fout].set(1.0)
            beta = jnp.zeros((1, fout_pad), jnp.float32)
            self.params.append((w_pad, b_pad, gamma, beta))
            fin_prev_pad = fout_pad

    def __call__(self, x):
        out = fused_regression_forward(x, self.params,
                                       self.batch_normalise,
                                       self.activation_relu)
        return out[:, : self.features[-1]]     # drop lane padding

    def reference(self, x):
        """Pure-JAX reference (uses the same padded params; padded columns are
        exact zeros, so real columns match the unpadded math)."""
        y = x.astype(jnp.float32)
        n = y.shape[0]
        for (w, b, gamma, beta), bn, relu in zip(
                self.params, self.batch_normalise, self.activation_relu):
            y = y @ w + b
            if bn:
                if n > 1:
                    mean = jnp.mean(y, axis=0, keepdims=True)
                    var = jnp.mean((y - mean) ** 2, axis=0, keepdims=True)
                    y = (y - mean) * jax.lax.rsqrt(var + BN_EPS) * gamma + beta
                else:
                    y = y * jax.lax.rsqrt(jnp.float32(1.0 + BN_EPS)) * gamma + beta
            if relu:
                y = jnp.maximum(y, 0.0)
        return y[:, : self.features[-1]]


if __name__ == "__main__":
    key = jax.random.PRNGKey(0)
    key, kx, kx1, kp = jax.random.split(key, 4)

    # RegressionArchitecture(
    #   layer_types=[Linear, Linear, Linear],
    #   features=[32, 64, 64, 16],
    #   activation_funcs=[ReLU, ReLU, None],
    #   batch_normalise=[True, True, False])
    features = [32, 64, 64, 16]
    activation_relu = [True, True, False]
    batch_normalise = [True, True, False]

    model = RegressionLayerPallas(features, activation_relu, batch_normalise, kp)

    # Normal batch.
    N = 8
    x = jax.random.normal(kx, (N, features[0]), jnp.float32)
    out = jax.block_until_ready(model(x))
    ref = model.reference(x)
    assert out.shape == (N, features[-1])
    np.testing.assert_allclose(np.asarray(out), np.asarray(ref),
                               rtol=1e-4, atol=1e-4)

    # Single-element batch (torch_geometric allow_single_element path).
    x1 = jax.random.normal(kx1, (1, features[0]), jnp.float32)
    out1 = jax.block_until_ready(model(x1))
    ref1 = model.reference(x1)
    assert out1.shape == (1, features[-1])
    np.testing.assert_allclose(np.asarray(out1), np.asarray(ref1),
                               rtol=1e-4, atol=1e-4)

    print("KERNEL_OK")
</pallas_src>

<mosaic_0001>
module attributes {stable_mosaic.version = 11 : i64} {
  func.func @_fused_mlp_kernel(%arg0: memref<8x32xf32, #tpu.memory_space<vmem>>, %arg1: memref<32x128xf32, #tpu.memory_space<vmem>>, %arg2: memref<1x128xf32, #tpu.memory_space<vmem>>, %arg3: memref<1x128xf32, #tpu.memory_space<vmem>>, %arg4: memref<1x128xf32, #tpu.memory_space<vmem>>, %arg5: memref<128x128xf32, #tpu.memory_space<vmem>>, %arg6: memref<1x128xf32, #tpu.memory_space<vmem>>, %arg7: memref<1x128xf32, #tpu.memory_space<vmem>>, %arg8: memref<1x128xf32, #tpu.memory_space<vmem>>, %arg9: memref<128x128xf32, #tpu.memory_space<vmem>>, %arg10: memref<1x128xf32, #tpu.memory_space<vmem>>, %arg11: memref<1x128xf32, #tpu.memory_space<vmem>>, %arg12: memref<1x128xf32, #tpu.memory_space<vmem>>, %arg13: memref<8x128xf32, #tpu.memory_space<vmem>>) attributes {dimension_semantics = [], scalar_prefetch = 0 : i64, scratch_operands = 0 : i64, tpu.core_type = #tpu.core_type<tc>} {
    %c0 = arith.constant 0 : index
    %c0_0 = arith.constant 0 : index
    %0 = vector.load %arg0[%c0, %c0_0] : memref<8x32xf32, #tpu.memory_space<vmem>>, vector<8x32xf32>
    %c0_1 = arith.constant 0 : index
    %c0_2 = arith.constant 0 : index
    %1 = vector.load %arg1[%c0_1, %c0_2] : memref<32x128xf32, #tpu.memory_space<vmem>>, vector<32x128xf32>
    %cst = arith.constant dense<0.000000e+00> : vector<8x128xf32>
    %2 = tpu.matmul %0, %1, %cst {dimension_numbers = #tpu.dot_dimension_numbers<[1], [0], [0], [1], [0, 0, 1, 1], [], []>} : vector<8x32xf32>, vector<32x128xf32>, vector<8x128xf32> -> vector<8x128xf32>
    %cst_3 = arith.constant dense<0.000000e+00> : vector<128xf32>
    %3 = vector.multi_reduction <add>, %2, %cst_3 [0] : vector<8x128xf32> to vector<128xf32>
    %4 = vector.shape_cast %3 : vector<128xf32> to vector<1x128xf32>
    %cst_4 = arith.constant 1.250000e-01 : f32
    %5 = vector.broadcast %cst_4 : f32 to vector<1x128xf32>
    %6 = arith.mulf %4, %5 : vector<1x128xf32>
    %7 = arith.mulf %2, %2 : vector<8x128xf32>
    %cst_5 = arith.constant dense<0.000000e+00> : vector<128xf32>
    %8 = vector.multi_reduction <add>, %7, %cst_5 [0] : vector<8x128xf32> to vector<128xf32>
    %9 = vector.shape_cast %8 : vector<128xf32> to vector<1x128xf32>
    %cst_6 = arith.constant 1.250000e-01 : f32
    %10 = vector.broadcast %cst_6 : f32 to vector<1x128xf32>
    %11 = arith.mulf %9, %10 : vector<1x128xf32>
    %12 = arith.mulf %6, %6 : vector<1x128xf32>
    %13 = arith.subf %11, %12 : vector<1x128xf32>
    %cst_7 = arith.constant 0.000000e+00 : f32
    %14 = vector.broadcast %cst_7 : f32 to vector<1x128xf32>
    %15 = arith.maximumf %13, %14 : vector<1x128xf32>
    %c0_8 = arith.constant 0 : index
    %c0_9 = arith.constant 0 : index
    %16 = vector.load %arg3[%c0_8, %c0_9] : memref<1x128xf32, #tpu.memory_space<vmem>>, vector<1x128xf32>
    %cst_10 = arith.constant 9.99999974E-6 : f32
    %17 = vector.broadcast %cst_10 : f32 to vector<1x128xf32>
    %18 = arith.addf %15, %17 : vector<1x128xf32>
    %19 = math.rsqrt %18 : vector<1x128xf32>
    %20 = arith.mulf %16, %19 : vector<1x128xf32>
    %21 = vector.broadcast %6 : vector<1x128xf32> to vector<8x128xf32>
    %22 = arith.subf %2, %21 : vector<8x128xf32>
    %23 = vector.broadcast %20 : vector<1x128xf32> to vector<8x128xf32>
    %24 = arith.mulf %22, %23 : vector<8x128xf32>
    %c0_11 = arith.constant 0 : index
    %c0_12 = arith.constant 0 : index
    %25 = vector.load %arg4[%c0_11, %c0_12] : memref<1x128xf32, #tpu.memory_space<vmem>>, vector<1x128xf32>
    %26 = vector.broadcast %25 : vector<1x128xf32> to vector<8x128xf32>
    %27 = arith.addf %24, %26 : vector<8x128xf32>
    %cst_13 = arith.constant 0.000000e+00 : f32
    %28 = vector.broadcast %cst_13 : f32 to vector<8x128xf32>
    %29 = arith.maximumf %27, %28 : vector<8x128xf32>
    %c0_14 = arith.constant 0 : index
    %c0_15 = arith.constant 0 : index
    %30 = vector.load %arg5[%c0_14, %c0_15] : memref<128x128xf32, #tpu.memory_space<vmem>>, vector<128x128xf32>
    %cst_16 = arith.constant dense<0.000000e+00> : vector<8x128xf32>
    %31 = tpu.matmul %29, %30, %cst_16 {dimension_numbers = #tpu.dot_dimension_numbers<[1], [0], [0], [1], [0, 0, 1, 1], [], []>} : vector<8x128xf32>, vector<128x128xf32>, vector<8x128xf32> -> vector<8x128xf32>
    %cst_17 = arith.constant dense<0.000000e+00> : vector<128xf32>
    %32 = vector.multi_reduction <add>, %31, %cst_17 [0] : vector<8x128xf32> to vector<128xf32>
    %33 = vector.shape_cast %32 : vector<128xf32> to vector<1x128xf32>
    %cst_18 = arith.constant 1.250000e-01 : f32
    %34 = vector.broadcast %cst_18 : f32 to vector<1x128xf32>
    %35 = arith.mulf %33, %34 : vector<1x128xf32>
    %36 = arith.mulf %31, %31 : vector<8x128xf32>
    %cst_19 = arith.constant dense<0.000000e+00> : vector<128xf32>
    %37 = vector.multi_reduction <add>, %36, %cst_19 [0] : vector<8x128xf32> to vector<128xf32>
    %38 = vector.shape_cast %37 : vector<128xf32> to vector<1x128xf32>
    %cst_20 = arith.constant 1.250000e-01 : f32
    %39 = vector.broadcast %cst_20 : f32 to vector<1x128xf32>
    %40 = arith.mulf %38, %39 : vector<1x128xf32>
    %41 = arith.mulf %35, %35 : vector<1x128xf32>
    %42 = arith.subf %40, %41 : vector<1x128xf32>
    %cst_21 = arith.constant 0.000000e+00 : f32
    %43 = vector.broadcast %cst_21 : f32 to vector<1x128xf32>
    %44 = arith.maximumf %42, %43 : vector<1x128xf32>
    %c0_22 = arith.constant 0 : index
    %c0_23 = arith.constant 0 : index
    %45 = vector.load %arg7[%c0_22, %c0_23] : memref<1x128xf32, #tpu.memory_space<vmem>>, vector<1x128xf32>
    %cst_24 = arith.constant 9.99999974E-6 : f32
    %46 = vector.broadcast %cst_24 : f32 to vector<1x128xf32>
    %47 = arith.addf %44, %46 : vector<1x128xf32>
    %48 = math.rsqrt %47 : vector<1x128xf32>
    %49 = arith.mulf %45, %48 : vector<1x128xf32>
    %50 = vector.broadcast %35 : vector<1x128xf32> to vector<8x128xf32>
    %51 = arith.subf %31, %50 : vector<8x128xf32>
    %52 = vector.broadcast %49 : vector<1x128xf32> to vector<8x128xf32>
    %53 = arith.mulf %51, %52 : vector<8x128xf32>
    %c0_25 = arith.constant 0 : index
    %c0_26 = arith.constant 0 : index
    %54 = vector.load %arg8[%c0_25, %c0_26] : memref<1x128xf32, #tpu.memory_space<vmem>>, vector<1x128xf32>
    %55 = vector.broadcast %54 : vector<1x128xf32> to vector<8x128xf32>
    %56 = arith.addf %53, %55 : vector<8x128xf32>
    %cst_27 = arith.constant 0.000000e+00 : f32
    %57 = vector.broadcast %cst_27 : f32 to vector<8x128xf32>
    %58 = arith.maximumf %56, %57 : vector<8x128xf32>
    %c0_28 = arith.constant 0 : index
    %c0_29 = arith.constant 0 : index
    %59 = vector.load %arg9[%c0_28, %c0_29] : memref<128x128xf32, #tpu.memory_space<vmem>>, vector<128x128xf32>
    %cst_30 = arith.constant dense<0.000000e+00> : vector<8x128xf32>
    %60 = tpu.matmul %58, %59, %cst_30 {dimension_numbers = #tpu.dot_dimension_numbers<[1], [0], [0], [1], [0, 0, 1, 1], [], []>} : vector<8x128xf32>, vector<128x128xf32>, vector<8x128xf32> -> vector<8x128xf32>
    %c0_31 = arith.constant 0 : index
    %c0_32 = arith.constant 0 : index
    %61 = vector.load %arg10[%c0_31, %c0_32] : memref<1x128xf32, #tpu.memory_space<vmem>>, vector<1x128xf32>
    %62 = vector.broadcast %61 : vector<1x128xf32> to vector<8x128xf32>
    %63 = arith.addf %60, %62 : vector<8x128xf32>
    %c0_33 = arith.constant 0 : index
    %c0_34 = arith.constant 0 : index
    %64 = vector.load %arg13[%c0_33, %c0_34] : memref<8x128xf32, #tpu.memory_space<vmem>>, vector<8x128xf32>
    tpu.vector_store %arg13[%c0_33, %c0_34], %63 {strides = array<i32>} : memref<8x128xf32, #tpu.memory_space<vmem>>, vector<8x128xf32>,
    return
  }
}

</mosaic_0001>

<bundles_post_ra>
// kernel: tpu_custom_call.1
= control target key start
LH: loop header
LB: loop body
LE: loop exit
PB: predicated region body
PF: predicated region fallthrough
CT: control target
= control target key end

     0   :  { %18 = vsyncpa [#allocation3], 0  ;;  %s864_s0 = inlined_call_operand.hbm [shape: f32[8,32], index: 0, kind: input, shape index: {}]   ;;  %s865_s1 = inlined_call_operand.hbm [shape: f32[32,128], index: 1, kind: input, shape index: {}]   ;;  %s866_s2 = inlined_call_operand.vmem [shape: f32[1,128], index: 2, kind: input, shape index: {}]   ;;  %s867_s3 = inlined_call_operand.vmem [shape: f32[1,128], index: 3, kind: input, shape index: {}]   ;;  %s868_s4 = inlined_call_operand.vmem [shape: f32[1,128], index: 4, kind: input, shape index: {}]   ;;  %s869_s5 = inlined_call_operand.hbm [shape: f32[128,128], index: 5, kind: input, shape index: {}]   ;;  %s870_s6 = inlined_call_operand.vmem [shape: f32[1,128], index: 6, kind: input, shape index: {}]   ;;  %s871_s7 = inlined_call_operand.vmem [shape: f32[1,128], index: 7, kind: input, shape index: {}]   ;;  %s872_s8 = inlined_call_operand.vmem [shape: f32[1,128], index: 8, kind: input, shape index: {}]   ;;  %s873_s9 = inlined_call_operand.hbm [shape: f32[128,128], index: 9, kind: input, shape index: {}]   ;;  %s874_s10 = inlined_call_operand.vmem [shape: f32[1,128], index: 10, kind: input, shape index: {}]   ;;  %s875_s11 = inlined_call_operand.vmem [shape: f32[1,128], index: 11, kind: input, shape index: {}]   ;;  %s876_s12 = inlined_call_operand.vmem [shape: f32[1,128], index: 12, kind: input, shape index: {}]   ;;  %s877_s13 = inlined_call_operand.hbm [shape: f32[8,128], index: 13, kind: output, shape index: {}]  }
   0x1   :  { %19 = vsyncpa [#allocation6], 0 }
   0x2   :  { %20 = vsyncpa [#allocation9], 0 }
   0x3   :  { %21 = vsyncpa [#allocation4], 0  ;;  %s697_s23 = smov [#allocation5]  }
   0x4   :  { %s37_s24 = sshll.u32 %s697_s23, 4  ;;  %s38_s24 = int_to_ptr.vmem [resolvable:$true] %s37_s24 }
   0x5   :  { %s597_s25 = scalar_lea.vmem %s38_s24, 512  ;;  %p602_p1 = scmp.lt.s32.totalorder %s38_s24, %s38_s24 }
   0x6   :  { %p598_p0 = scmp.ne.s32.totalorder %s38_s24, %s597_s25  ;;  %p603_p2 = scmp.lt.s32.totalorder %s597_s25, %s597_s25 }
   0x8   :  { %p604_p3 = por %p603_p2, %p602_p1 }
   0xa   :  { %p605_p4 = pnand %p604_p3, %p598_p0 }
   0xc   :  { %608 = shalt.err (!%p605_p4)
}
   0xd   :  { %s698_s11 = smov 128   ;;  %s699_s26 = smov 8  }
   0xe   :  { %43 = dma.hbm_to_vmem [thread:$0]  %s865_s1, 512, %s38_s24, [#allocation6], %s698_s11, %s698_s11, %s699_s26  }
   0xf   :  { %s700_s28 = smov [#allocation2]   ;;  %s701_s30 = smov [#allocation7]  }
  0x10   :  { %s28_s29 = sshll.u32 %s700_s28, 4  ;;  %s55_s14 = sshll.u32 %s701_s30, 4  ;;  %s29_s29 = int_to_ptr.vmem [resolvable:$true] %s28_s29  ;;  %s56_s14 = int_to_ptr.vmem [resolvable:$true] %s55_s14 }
  0x11   :  { %s617_s15 = scalar_lea.vmem %s29_s29, 128  ;;  %p622_p6 = scmp.lt.s32.totalorder %s29_s29, %s29_s29 }
  0x12   :  { %p618_p5 = scmp.ne.s32.totalorder %s29_s29, %s617_s15  ;;  %p623_p7 = scmp.lt.s32.totalorder %s617_s15, %s617_s15 }
  0x14   :  { %p624_p8 = por %p623_p7, %p622_p6 }
  0x16   :  { %p625_p9 = pnand %p624_p8, %p618_p5 }
  0x18   :  { %628 = shalt.err (!%p625_p9)
}
  0x19   :  { %31 = dma.hbm_to_vmem [thread:$0]  %s864_s0, 128, %s29_s29, [#allocation3]  }
  0x1a   :  { %s637_s17 = scalar_lea.vmem %s56_s14, 2048  ;;  %p642_p11 = scmp.lt.s32.totalorder %s56_s14, %s56_s14 }
  0x1b   :  { %p638_p10 = scmp.ne.s32.totalorder %s56_s14, %s637_s17  ;;  %p643_p12 = scmp.lt.s32.totalorder %s637_s17, %s637_s17 }
  0x1d   :  { %p644_p13 = por %p643_p12, %p642_p11 }
  0x1f   :  { %p645_p0 = pnand %p644_p13, %p638_p10 }
  0x21   :  { %648 = shalt.err (!%p645_p0)
}
  0x22   :  { %61 = dma.hbm_to_vmem [thread:$0]  %s869_s5, 2048, %s56_s14, [#allocation6], %s698_s11, %s698_s11, %s699_s26  }
  0x23   :  { %s702_s19 = smov [#allocation8]  }
  0x24   :  { %s73_s20 = sshll.u32 %s702_s19, 4  ;;  %s74_s20 = int_to_ptr.vmem [resolvable:$true] %s73_s20 }
  0x25   :  { %s657_s21 = scalar_lea.vmem %s74_s20, 2048  ;;  %p662_p2 = scmp.lt.s32.totalorder %s74_s20, %s74_s20 }
  0x26   :  { %p658_p1 = scmp.ne.s32.totalorder %s74_s20, %s657_s21  ;;  %p663_p3 = scmp.lt.s32.totalorder %s657_s21, %s657_s21 }
  0x28   :  { %p664_p4 = por %p663_p3, %p662_p2 }
  0x2a   :  { %p665_p5 = pnand %p664_p4, %p658_p1 }
  0x2c   :  { %668 = shalt.err (!%p665_p5)
}
  0x2d   :  { %79 = dma.hbm_to_vmem [thread:$0]  %s873_s9, 2048, %s74_s20, [#allocation9], %s698_s11, %s698_s11, %s699_s26  }
  0x2e   :  { %689 = dma.done.wait [#allocation3], 128  }
  0x2f   :  { %690 = vsyncadd [#allocation3], 4294967168 }
  0x30   :  { %691 = dma.done.wait [#allocation6], 2560  }
  0x31   :  { %692 = vsyncadd [#allocation6], 4294964736 }
  0x32   :  { %693 = dma.done.wait [#allocation9], 2048  }
  0x33   :  { %694 = vsyncadd [#allocation9], 4294965248  ;;  %v703_v0 = vmov 0.0   ;;  %vm704_vm0 = vmmov 0   ;;  %v102_v1 = vld [vmem:[#allocation5 + $0x18] sm:$0xff]  ;;  %v101_v2 = vld [vmem:[#allocation5 + $0x10] sm:$0xff]  ;;  %v201_v43 = vlaneseq }
  0x34   :  { %495 = vmatprep.subr.mxu0 %v703_v0  ;;  %503 = vmatprep.mubr.msk.f32.mxu0 %vm704_vm0, %v703_v0  ;;  %v100_v3 = vld [vmem:[#allocation5 + $0x8] sm:$0xff]  ;;  %v99_v4 = vld [vmem:[#allocation5] sm:$0xff]  ;;  %v98_v5 = vld [vmem:[#allocation2] sm:$0xff]  ;;  %vm103_vm1 = vcmask 261120   ;;  %s705_s12 = smov [#allocation10]  }
  0x35   :  { %506 = vmatprep.subr.mxu1 %v703_v0  ;;  %538 = vmatprep.mubr.msk.f32.mxu1 %vm704_vm0, %v703_v0  ;;  %v231_v6 = vld [vmem:[#allocation7 + $0x78] sm:$0xff]  ;;  %v230_v7 = vld [vmem:[#allocation7 + $0x70] sm:$0xff]  ;;  %v229_v8 = vld [vmem:[#allocation7 + $0x68] sm:$0xff]  ;;  %v824_v44 = vshrl.u32 %v201_v43, 7 }
  0x36   :  { %496 = vmatpush3.msra.mxu0 %v102_v1  ;;  %507 = vmatpush3.msra.mxu1 %v231_v6  ;;  %v228_v9 = vld [vmem:[#allocation7 + $0x60] sm:$0xff]  ;;  %v227_v10 = vld [vmem:[#allocation7 + $0x58] sm:$0xff]  ;;  %v226_v11 = vld [vmem:[#allocation7 + $0x50] sm:$0xff] }
  0x37   :  { %497 = vmatprep.subr.mxu0 %v703_v0  ;;  %508 = vmatprep.subr.mxu1 %v703_v0  ;;  %v225_v12 = vld [vmem:[#allocation7 + $0x48] sm:$0xff]  ;;  %v224_v13 = vld [vmem:[#allocation7 + $0x40] sm:$0xff]  ;;  %v223_v14 = vld [vmem:[#allocation7 + $0x38] sm:$0xff]  ;;  %v203_v46 = vsub.s32 0, %v824_v44 }
  0x38   :  { %498 = vmatpush3.msra.mxu0 %v101_v2  ;;  %509 = vmatpush3.msra.mxu1 %v230_v7  ;;  %v222_v15 = vld [vmem:[#allocation7 + $0x30] sm:$0xff]  ;;  %v221_v16 = vld [vmem:[#allocation7 + $0x28] sm:$0xff]  ;;  %v220_v17 = vld [vmem:[#allocation7 + $0x20] sm:$0xff] }
  0x39   :  { %499 = vmatprep.subr.mxu0 %v703_v0  ;;  %510 = vmatprep.subr.mxu1 %v703_v0  ;;  %v219_v18 = vld [vmem:[#allocation7 + $0x18] sm:$0xff]  ;;  %v218_v19 = vld [vmem:[#allocation7 + $0x10] sm:$0xff]  ;;  %v217_v20 = vld [vmem:[#allocation7 + $0x8] sm:$0xff] }
  0x3a   :  { %500 = vmatpush3.msra.mxu0 %v100_v3  ;;  %511 = vmatpush3.msra.mxu1 %v229_v8  ;;  %v216_v21 = vld [vmem:[#allocation7] sm:$0xff]  ;;  %v195_v45 = vld [vmem:[%s867_s3] sm:$0x1]  ;;  %v355_v56 = vld [vmem:[#allocation8 + $0x70] sm:$0xff] }
  0x3b   :  { %501 = vmatprep.subr.mxu0 %v703_v0  ;;  %512 = vmatprep.subr.mxu1 %v703_v0  ;;  %v453_v51 = vld [vmem:[%s868_s4] ss:$0 sm:$0xff]  ;;  %v354_v57 = vld [vmem:[#allocation8 + $0x68] sm:$0xff]  ;;  %v353_v58 = vld [vmem:[#allocation8 + $0x60] sm:$0xff] }
  0x3c   :  { %502 = vmatpush3.msra.mxu0 %v99_v4  ;;  %513 = vmatpush3.msra.mxu1 %v228_v9  ;;  %v356_v55 = vld [vmem:[#allocation8 + $0x78] sm:$0xff]  ;;  %v351_v60 = vld [vmem:[#allocation8 + $0x50] sm:$0xff]  ;;  %v350_v61 = vld [vmem:[#allocation8 + $0x48] sm:$0xff] }
  0x3d   :  { %504 = vmatmul.mubr.msk.f32.vlgmr.msra.gmra.mxu0 %vm103_vm1, %v98_v5  ;;  %541 = vmatprep.subr.mxu0 %v703_v0  ;;  %v352_v59 = vld [vmem:[#allocation8 + $0x58] sm:$0xff]  ;;  %v349_v62 = vld [vmem:[#allocation8 + $0x40] sm:$0xff]  ;;  %v347_v1 = vld [vmem:[#allocation8 + $0x30] sm:$0xff] }
  0x3e   :  { %573 = vmatprep.mubr.msk.f32.mxu0 %vm704_vm0, %v703_v0  ;;  %514 = vmatprep.subr.mxu1 %v703_v0  ;;  %v348_v63 = vld [vmem:[#allocation8 + $0x38] sm:$0xff]  ;;  %v346_v2 = vld [vmem:[#allocation8 + $0x28] sm:$0xff]  ;;  %v345_v3 = vld [vmem:[#allocation8 + $0x20] sm:$0xff] }
  0x3f   :  { %515 = vmatpush3.msra.mxu1 %v227_v10  ;;  %542 = vmatpush3.msra.mxu0 %v356_v55  ;;  %v344_v4 = vld [vmem:[#allocation8 + $0x18] sm:$0xff]  ;;  %v343_v5 = vld [vmem:[#allocation8 + $0x10] sm:$0xff]  ;;  %v342_v6 = vld [vmem:[#allocation8 + $0x8] sm:$0xff] }
  0x40   :  { %516 = vmatprep.subr.mxu1 %v703_v0  ;;  %543 = vmatprep.subr.mxu0 %v703_v0  ;;  %v341_v7 = vld [vmem:[#allocation8] sm:$0xff] }
  0x41   :  { %517 = vmatpush3.msra.mxu1 %v226_v11  ;;  %544 = vmatpush3.msra.mxu0 %v355_v56 }
  0x42   :  { %518 = vmatprep.subr.mxu1 %v703_v0  ;;  %545 = vmatprep.subr.mxu0 %v703_v0 }
  0x43   :  { %519 = vmatpush3.msra.mxu1 %v225_v12  ;;  %546 = vmatpush3.msra.mxu0 %v354_v57 }
  0x44   :  { %520 = vmatprep.subr.mxu1 %v703_v0  ;;  %547 = vmatprep.subr.mxu0 %v703_v0 }
  0x45   :  { %521 = vmatpush3.msra.mxu1 %v224_v13  ;;  %548 = vmatpush3.msra.mxu0 %v353_v58 }
  0x46   :  { %522 = vmatprep.subr.mxu1 %v703_v0  ;;  %549 = vmatprep.subr.mxu0 %v703_v0 }
  0x47   :  { %523 = vmatpush3.msra.mxu1 %v223_v14  ;;  %550 = vmatpush3.msra.mxu0 %v352_v59 }
  0x48   :  { %524 = vmatprep.subr.mxu1 %v703_v0  ;;  %551 = vmatprep.subr.mxu0 %v703_v0 }
  0x49   :  { %525 = vmatpush3.msra.mxu1 %v222_v15  ;;  %552 = vmatpush3.msra.mxu0 %v351_v60 }
  0x4a   :  { %526 = vmatprep.subr.mxu1 %v703_v0  ;;  %553 = vmatprep.subr.mxu0 %v703_v0 }
  0x4b   :  { %527 = vmatpush3.msra.mxu1 %v221_v16  ;;  %554 = vmatpush3.msra.mxu0 %v350_v61 }
  0x4c   :  { %528 = vmatprep.subr.mxu1 %v703_v0  ;;  %555 = vmatprep.subr.mxu0 %v703_v0 }
  0x4d   :  { %529 = vmatpush3.msra.mxu1 %v220_v17  ;;  %556 = vmatpush3.msra.mxu0 %v349_v62 }
  0x4e   :  { %530 = vmatprep.subr.mxu1 %v703_v0  ;;  %557 = vmatprep.subr.mxu0 %v703_v0 }
  0x4f   :  { %531 = vmatpush3.msra.mxu1 %v219_v18  ;;  %558 = vmatpush3.msra.mxu0 %v348_v63 }
  0x50   :  { %532 = vmatprep.subr.mxu1 %v703_v0  ;;  %559 = vmatprep.subr.mxu0 %v703_v0 }
  0x51   :  { %533 = vmatpush3.msra.mxu1 %v218_v19  ;;  %560 = vmatpush3.msra.mxu0 %v347_v1 }
  0x52   :  { %534 = vmatprep.subr.mxu1 %v703_v0  ;;  %561 = vmatprep.subr.mxu0 %v703_v0 }
  0x53   :  { %535 = vmatpush3.msra.mxu1 %v217_v20  ;;  %562 = vmatpush3.msra.mxu0 %v346_v2 }
  0x54   :  { %536 = vmatprep.subr.mxu1 %v703_v0  ;;  %563 = vmatprep.subr.mxu0 %v703_v0 }
  0x55   :  { %537 = vmatpush3.msra.mxu1 %v216_v21  ;;  %564 = vmatpush3.msra.mxu0 %v345_v3 }
  0x56   :  { %565 = vmatprep.subr.mxu0 %v703_v0 }
  0x57   :  { %566 = vmatpush3.msra.mxu0 %v344_v4 }
  0x58   :  { %567 = vmatprep.subr.mxu0 %v703_v0 }
  0x59   :  { %568 = vmatpush3.msra.mxu0 %v343_v5 }
  0x5a   :  { %569 = vmatprep.subr.mxu0 %v703_v0 }
  0x5b   :  { %570 = vmatpush3.msra.mxu0 %v342_v6 }
  0x5c   :  { %571 = vmatprep.subr.mxu0 %v703_v0 }
  0x5d   :  { %572 = vmatpush3.msra.mxu0 %v341_v7 }
  0xfd   :  { %v173_v22 = vpop.f32.mrf.mxu0 }
  0xfe   :  { %v177_v23 = vrot.slane %v173_v22, 4  ;;  %v184_v24 = vmul.f32 %v173_v22, %v173_v22 }
  0xff   :  { %v505_v25 = vpop.f32.mrf.mxu0 }
 0x100   :  { %v178_v26 = vadd.f32 %v177_v23, %v173_v22  ;;  %v185_v27 = vrot.slane %v184_v24, 4 }
 0x102   :  { %v179_v28 = vrot.slane %v178_v26, 2  ;;  %v186_v29 = vadd.f32 %v185_v27, %v184_v24 }
 0x104   :  { %v180_v30 = vadd.f32 %v179_v28, %v178_v26  ;;  %v187_v31 = vrot.slane %v186_v29, 2  ;;  %v320_v28 = vld [vmem:[%s871_s7] sm:$0x1]  ;;  %s441_s7 = sshll.u32 %s705_s12, 4  ;;  %s442_s7 = int_to_ptr.vmem [resolvable:$true] %s441_s7 }
 0x105   :  { %s669_s27 = scalar_lea.vmem %s442_s7, 128  ;;  %p674_p7 = scmp.lt.s32.totalorder %s442_s7, %s442_s7 }
 0x106   :  { %v181_v32 = vrot.slane %v180_v30, 1  ;;  %v188_v33 = vadd.f32 %v187_v31, %v186_v29  ;;  %p670_p6 = scmp.ne.s32.totalorder %s442_s7, %s669_s27  ;;  %p675_p8 = scmp.lt.s32.totalorder %s669_s27, %s669_s27 }
 0x108   :  { %v182_v34 = vadd.f32 %v181_v32, %v180_v30  ;;  %v189_v35 = vrot.slane %v188_v33, 1  ;;  %p676_p9 = por %p675_p8, %p674_p7 }
 0x10a   :  { %v183_v36 = vmul.f32 0.125, %v182_v34  ;;  %v190_v37 = vadd.f32 %v189_v35, %v188_v33  ;;  %v454_v33 = vld [vmem:[%s872_s8] ss:$0 sm:$0xff]  ;;  %p677_p10 = pnand %p676_p9, %p670_p6 }
 0x10c   :  { %v191_v38 = vmul.f32 0.125, %v190_v37  ;;  %v192_v39 = vmul.f32 %v183_v36, %v183_v36  ;;  %v199_v49 = vsub.f32 %v173_v22, %v183_v36  ;;  %v455_v37 = vld [vmem:[%s874_s10] ss:$0 sm:$0xff] }
 0x10e   :  { %v193_v40 = vsub.f32 %v191_v38, %v192_v39 }
 0x110   :  { %v194_v41 = vmax.f32 %v193_v40, 0.0 }
 0x112   :  { %v196_v42 = vadd.f32 1e-05, %v194_v41 }
 0x114   :  { %585 = vrsqrt.f32 %v196_v42 }
 0x121   :  { %v586_v47 = vpop.eup %585 }
 0x122   :  { %v198_v48 = vmul.f32 %v586_v47, %v195_v45 }
 0x124   :  { %v204_v50 = vrot.slane %v198_v48, %v203_v46 }
 0x126   :  { %v206_v52 = vmul.f32 %v204_v50, %v199_v49 }
 0x128   :  { %v214_v53 = vadd.f32 %v453_v51, %v206_v52 }
 0x12a   :  { %v215_v54 = vmax.f32 %v214_v53, 0.0 }
 0x12c   :  { %539 = vmatmul.mubr.f32.vlgmr.msra.gmra.mxu1 %v215_v54 }
 0x1ec   :  { %v298_v8 = vpop.f32.mrf.mxu1 }
 0x1ed   :  { %v302_v9 = vrot.slane %v298_v8, 4  ;;  %v309_v10 = vmul.f32 %v298_v8, %v298_v8 }
 0x1ee   :  { %v540_v11 = vpop.f32.mrf.mxu1 }
 0x1ef   :  { %v303_v12 = vadd.f32 %v302_v9, %v298_v8  ;;  %v310_v13 = vrot.slane %v309_v10, 4 }
 0x1f1   :  { %v304_v14 = vrot.slane %v303_v12, 2  ;;  %v311_v15 = vadd.f32 %v310_v13, %v309_v10 }
 0x1f3   :  { %v305_v16 = vadd.f32 %v304_v14, %v303_v12  ;;  %v312_v17 = vrot.slane %v311_v15, 2 }
 0x1f5   :  { %v306_v18 = vrot.slane %v305_v16, 1  ;;  %v313_v19 = vadd.f32 %v312_v17, %v311_v15 }
 0x1f7   :  { %v307_v20 = vadd.f32 %v306_v18, %v305_v16  ;;  %v314_v21 = vrot.slane %v313_v19, 1 }
 0x1f9   :  { %v308_v22 = vmul.f32 0.125, %v307_v20  ;;  %v315_v23 = vadd.f32 %v314_v21, %v313_v19 }
 0x1fb   :  { %v316_v24 = vmul.f32 0.125, %v315_v23  ;;  %v317_v25 = vmul.f32 %v308_v22, %v308_v22  ;;  %v324_v31 = vsub.f32 %v298_v8, %v308_v22 }
 0x1fd   :  { %v318_v0 = vsub.f32 %v316_v24, %v317_v25 }
 0x1ff   :  { %v319_v26 = vmax.f32 %v318_v0, 0.0 }
 0x201   :  { %v321_v27 = vadd.f32 1e-05, %v319_v26 }
 0x203   :  { %587 = vrsqrt.f32 %v321_v27 }
 0x210   :  { %v588_v29 = vpop.eup %587 }
 0x211   :  { %v323_v30 = vmul.f32 %v588_v29, %v320_v28 }
 0x213   :  { %v329_v32 = vrot.slane %v323_v30, %v203_v46 }
 0x215   :  { %v331_v34 = vmul.f32 %v329_v32, %v324_v31 }
 0x217   :  { %v339_v35 = vadd.f32 %v454_v33, %v331_v34 }
 0x219   :  { %v340_v36 = vmax.f32 %v339_v35, 0.0 }
 0x21b   :  { %574 = vmatmul.mubr.f32.vlgmr.msra.gmra.mxu0 %v340_v36 }
 0x2db   :  { %v430_v38 = vpop.f32.mrf.mxu0 }
 0x2dc   :  { %v431_v39 = vadd.f32 %v455_v37, %v430_v38 }
 0x2dd   :  { %v575_v40 = vpop.f32.mrf.mxu0 }
 0x2de   :  { %434 = vst [vmem:[#allocation10] sm:$0xff] %v431_v39 }
 0x2df   :  { %680 = shalt.err (!%p677_p10)
}
 0x2e0   :  { %444 = dma.vmem_to_hbm [thread:$0]  %s442_s7, 128, %s877_s13, [#allocation4]  }
 0x2e1   :  { %695 = dma.done.wait [#allocation4], 128  }
 0x2e2   :  { %696 = vsyncadd [#allocation4], 4294967168 }
 0x2e3   :  { %448 = vsyncpa [#allocation3], 1 }
 0x2e4   :  { %449 = vsyncpa [#allocation6], 1 }
 0x2e5   :  { %450 = vsyncpa [#allocation9], 1 }
 0x2e6   :  { %451 = vsyncpa [#allocation4], 1 }

</bundles_post_ra>
